<compile_context>
chip_gen: v5e
topology: v5e:2x2
jax: 0.10.0
libtpu: 0.0.40
codegen_flags: <defaults>
</compile_context>

<pallas_src>
import functools

import jax
import jax.numpy as jnp
from jax import lax
from jax.experimental import pallas as pl
from jax.experimental.pallas import tpu as pltpu


def _round_up(x, m):
    return ((x + m - 1) // m) * m


def _pick_unroll(t):
    for u in (8, 4, 2, 1):
        if t % u == 0:
            return u
    return 1


def adaptation_rnn_kernel(x_seq_ref, g0_ref, u0_ref, v0_ref,
                          w_rec_hbm, w_in_hbm,
                          g_ref, v_ref,
                          u_s, xin_s, w_rec_s, w_in_s,
                          *, alpha, beta, t_chunk, batch, seq_len,
                          guard_tail, compute_dtype):
    c = pl.program_id(0)

    # One-time work on the first chunk: seed the recurrent state and DMA the
    # two recurrence weights HBM -> VMEM once (single-buffered, reused
    # unchanged by every grid step).
    @pl.when(c == 0)
    def _():
        g_ref[...] = g0_ref[...]
        u_s[...] = u0_ref[...]
        v_ref[...] = v0_ref[...]
        pltpu.sync_copy(w_rec_hbm, w_rec_s)
        pltpu.sync_copy(w_in_hbm, w_in_s)

    # Hoisted input projection: ONE MXU matmul for the whole chunk, staged
    # through VMEM so the serial recurrence below only slices a ref.
    xin_s[...] = jnp.dot(x_seq_ref[...], w_in_s[...],
                         preferred_element_type=jnp.float32)

    base = c * t_chunk

    def body(i, carry):
        g, u, v = carry
        off = pl.multiple_of(i * batch, batch)
        x_t = xin_s[pl.ds(off, batch), :]
        u_new = (-beta * v
                 + jnp.dot(g.astype(compute_dtype), w_rec_s[...],
                           preferred_element_type=jnp.float32)
                 + x_t)
        v_new = v + alpha * (u - v)          # uses pre-update u (matches ref)
        g_new = jnp.maximum(u_new, 0.0)
        if guard_tail:                        # static: only when S % T != 0
            valid = (base + i) < seq_len
            g_new = jnp.where(valid, g_new, g)
            u_new = jnp.where(valid, u_new, u)
            v_new = jnp.where(valid, v_new, v)
        return g_new, u_new, v_new

    g, u, v = lax.fori_loop(0, t_chunk, body,
                            (g_ref[...], u_s[...], v_ref[...]),
                            unroll=_pick_unroll(t_chunk))
    g_ref[...] = g
    u_s[...] = u
    v_ref[...] = v


def adaptation_rnn(x_seq, x_init, params, *, alpha, beta, t_chunk=32,
                   compute_dtype=jnp.bfloat16):
    """x_seq: [S, B, N] time-major; x_init: [B, N]. Returns (p, g, adaptation_v)."""
    S, B, N = x_seq.shape
    P = params["w_out"].shape[0]
    f32 = jnp.float32
    cdt = jnp.dtype(compute_dtype)

    Np = _round_up(N, 128)
    Bp = _round_up(B, 8)
    T = max(1, min(int(t_chunk), S))
    n_chunks = pl.cdiv(S, T)
    S_pad = n_chunks * T
    guard_tail = (S_pad != S)

    # ---- init projection: tiny, off the recurrence -> plain XLA ---------
    h_init = (x_init.astype(f32) @ params["w_init"].astype(f32).T
              + params["b_init"].astype(f32))

    def pad_state(a):
        return jnp.zeros((Bp, Np), f32).at[:B, :N].set(a)

    g0 = pad_state(jnp.maximum(h_init, 0.0))
    u0 = pad_state(h_init)
    v0 = jnp.zeros((Bp, Np), f32)            # padded rows/cols stay exactly 0

    # ---- recurrence weights: pre-transpose (y = x @ W.T), pad, cast ------
    def pad_w(a):
        out = jnp.zeros((Np, Np), f32).at[:a.shape[0], :a.shape[1]].set(
            a.astype(f32))
        return out.astype(compute_dtype)

    w_rec_t = pad_w(params["w_rec"].T)
    w_in_t = pad_w(params["w_in"].T)

    # ---- x_seq: pad only if needed; flatten so a chunk is one contiguous,
    # tile-aligned (T*Bp, Np) block in the compute dtype. ------------------
    if (B, N, S) == (Bp, Np, S_pad):
        x_seq_p = x_seq.astype(compute_dtype).reshape(S * B, N)
    else:
        x_seq_p = (jnp.zeros((S_pad, Bp, Np), compute_dtype)
                   .at[:S, :B, :N].set(x_seq.astype(compute_dtype)))
        x_seq_p = x_seq_p.reshape(S_pad * Bp, Np)

    kernel = functools.partial(
        adaptation_rnn_kernel, alpha=float(alpha), beta=float(beta),
        t_chunk=T, batch=Bp, seq_len=S, guard_tail=guard_tail,
        compute_dtype=compute_dtype)

    state_spec = pl.BlockSpec((Bp, Np), lambda c: (0, 0))

    # Explicit VMEM budget (feedback #3): double-buffered x stream + resident
    # state/scratch + single-buffered weights, with ~30% headroom.
    cb = cdt.itemsize
    est = (2 * T * Bp * Np * cb              # x_seq chunk (double-buffered)
           + 3 * 2 * Bp * Np * 4             # g0/u0/v0 inputs
           + 2 * 2 * Bp * Np * 4             # g/v outputs
           + (1 + T) * Bp * Np * 4           # u scratch + staged projection
           + 2 * Np * Np * cb)               # single-buffered w_rec/w_in
    vmem_limit = int(min(64 * 1024 * 1024, max(32 * 1024 * 1024, 1.3 * est)))

    grid_spec = pltpu.PrefetchScalarGridSpec(
        num_scalar_prefetch=0,
        grid=(n_chunks,),
        in_specs=[
            pl.BlockSpec((T * Bp, Np), lambda c: (c, 0)),   # x_seq chunk
            state_spec, state_spec, state_spec,             # g0, u0, v0
            pl.BlockSpec(memory_space=pl.ANY),              # W_rec^T (HBM)
            pl.BlockSpec(memory_space=pl.ANY),              # W_in^T  (HBM)
        ],
        out_specs=[state_spec, state_spec],                 # g, v (resident)
        scratch_shapes=[
            pltpu.VMEM((Bp, Np), f32),                      # u state
            pltpu.VMEM((T * Bp, Np), f32),                  # staged x @ W_in^T
            pltpu.VMEM((Np, Np), compute_dtype),            # W_rec (1-buffered)
            pltpu.VMEM((Np, Np), compute_dtype),            # W_in  (1-buffered)
        ],
    )

    g_pad, v_pad = pl.pallas_call(
        kernel,
        out_shape=(jax.ShapeDtypeStruct((Bp, Np), f32),
                   jax.ShapeDtypeStruct((Bp, Np), f32)),
        grid_spec=grid_spec,
        compiler_params=pltpu.CompilerParams(
            dimension_semantics=("arbitrary",),             # serial recurrence
            vmem_limit_bytes=vmem_limit),
    )(x_seq_p, g0, u0, v0, w_rec_t, w_in_t)

    g = g_pad[:B, :N]
    v = v_pad[:B, :N]

    # ---- output projection: tiny, only touches the final g -> plain XLA --
    p = g @ params["w_out"].astype(f32).T + params["b_out"].astype(f32)
    return p, g, v


def adaptation_rnn_ref(x_seq, x_init, params, *, alpha, beta):
    """Pure-JAX reference of the same semantics."""
    h_init = x_init @ params["w_init"].T + params["b_init"]
    g = jnp.maximum(h_init, 0.0)
    u = h_init
    v = jnp.zeros_like(h_init)
    for t in range(x_seq.shape[0]):
        u_new = (-beta * v + g @ params["w_rec"].T
                 + x_seq[t] @ params["w_in"].T)
        v_new = v + alpha * (u - v)
        g = jnp.maximum(u_new, 0.0)
        u, v = u_new, v_new
    p = g @ params["w_out"].T + params["b_out"]
    return p, g, v


if __name__ == "__main__":
    B, S, N, P = 4, 8, 32, 8          # batch, seq, num_nodes, num_pcs
    alpha, beta = 0.1, 0.5

    key = jax.random.PRNGKey(0)
    ks = jax.random.split(key, 7)
    x_seq = jax.random.normal(ks[0], (S, B, N), jnp.float32)   # inputs[0], time-major
    x_init = jax.random.normal(ks[1], (B, N), jnp.float32)     # inputs[1]

    params = {
        "w_init": 0.1 * jax.random.normal(ks[2], (N, N), jnp.float32),
        "b_init": 0.1 * jax.random.normal(ks[3], (N,), jnp.float32),
        "w_rec": jnp.eye(N, dtype=jnp.float32),                # nn.init.eye_
        "w_in": 0.1 * jax.random.normal(ks[4], (N, N), jnp.float32),
        "w_out": 0.1 * jax.random.normal(ks[5], (P, N), jnp.float32),
        "b_out": 0.1 * jax.random.normal(ks[6], (P,), jnp.float32),
    }

    p_ref, g_ref_, v_ref_ = adaptation_rnn_ref(x_seq, x_init, params,
                                               alpha=alpha, beta=beta)

    # 1) f32 compute path: bit-close to the reference.
    p, g, v = adaptation_rnn(x_seq, x_init, params, alpha=alpha, beta=beta,
                             compute_dtype=jnp.float32)
    jax.block_until_ready((p, g, v))
    assert jnp.allclose(p, p_ref, atol=1e-4, rtol=1e-4)
    assert jnp.allclose(g, g_ref_, atol=1e-4, rtol=1e-4)
    assert jnp.allclose(v, v_ref_, atol=1e-4, rtol=1e-4)

    # 2) bf16-operand / f32-accumulation path (default, per perf review):
    #    relaxed tolerance vs the f32 reference.
    p16, g16, v16 = adaptation_rnn(x_seq, x_init, params, alpha=alpha, beta=beta)
    jax.block_until_ready((p16, g16, v16))
    assert jnp.allclose(p16, p_ref, atol=5e-2, rtol=5e-2)
    assert jnp.allclose(g16, g_ref_, atol=5e-2, rtol=5e-2)
    assert jnp.allclose(v16, v_ref_, atol=5e-2, rtol=5e-2)

    # 3) Ragged tail: S not a multiple of T_CHUNK (exercises the masked tail).
    S2 = 7
    x_seq2 = x_seq[:S2]
    p2_ref, g2_ref, v2_ref = adaptation_rnn_ref(x_seq2, x_init, params,
                                                alpha=alpha, beta=beta)
    p2, g2, v2 = adaptation_rnn(x_seq2, x_init, params, alpha=alpha, beta=beta,
                                t_chunk=4, compute_dtype=jnp.float32)
    jax.block_until_ready((p2, g2, v2))
    assert jnp.allclose(p2, p2_ref, atol=1e-4, rtol=1e-4)
    assert jnp.allclose(g2, g2_ref, atol=1e-4, rtol=1e-4)
    assert jnp.allclose(v2, v2_ref, atol=1e-4, rtol=1e-4)

    print("KERNEL_OK")
</pallas_src>

<mosaic_0001>
module attributes {stable_mosaic.version = 11 : i64} {
  func.func @adaptation_rnn_kernel(%arg0: i32, %arg1: memref<64x128xf32, #tpu.memory_space<vmem>>, %arg2: memref<8x128xf32, #tpu.memory_space<vmem>>, %arg3: memref<8x128xf32, #tpu.memory_space<vmem>>, %arg4: memref<8x128xf32, #tpu.memory_space<vmem>>, %arg5: memref<128x128xf32, #tpu.memory_space<any>>, %arg6: memref<128x128xf32, #tpu.memory_space<any>>, %arg7: memref<8x128xf32, #tpu.memory_space<vmem>>, %arg8: memref<8x128xf32, #tpu.memory_space<vmem>>, %arg9: memref<8x128xf32, #tpu.memory_space<vmem>>, %arg10: memref<64x128xf32, #tpu.memory_space<vmem>>, %arg11: memref<128x128xf32, #tpu.memory_space<vmem>>, %arg12: memref<128x128xf32, #tpu.memory_space<vmem>>) attributes {dimension_semantics = [#tpu.dimension_semantics<arbitrary>], iteration_bounds = array<i64: 1>, scalar_prefetch = 0 : i64, scratch_operands = 4 : i64, tpu.core_type = #tpu.core_type<tc>, window_params = [{transform_indices = @transform_0, window_bounds = array<i64: 64, 128>}, {pipeline_mode = #tpu.pipeline_mode<synchronous>, transform_indices = @transform_1, window_bounds = array<i64: 8, 128>}, {pipeline_mode = #tpu.pipeline_mode<synchronous>, transform_indices = @transform_2, window_bounds = array<i64: 8, 128>}, {pipeline_mode = #tpu.pipeline_mode<synchronous>, transform_indices = @transform_3, window_bounds = array<i64: 8, 128>}, {}, {}, {pipeline_mode = #tpu.pipeline_mode<synchronous>, transform_indices = @transform_6, window_bounds = array<i64: 8, 128>}, {pipeline_mode = #tpu.pipeline_mode<synchronous>, transform_indices = @transform_7, window_bounds = array<i64: 8, 128>}]} {
    %c0_i32 = arith.constant 0 : i32
    %0 = arith.cmpi eq, %arg0, %c0_i32 : i32
    %1 = arith.extui %0 : i1 to i32
    %c0_i32_0 = arith.constant 0 : i32
    %2 = arith.cmpi ne, %1, %c0_i32_0 : i32
    scf.if %2 {
      %c0_83 = arith.constant 0 : index
      %c0_84 = arith.constant 0 : index
      %141 = vector.load %arg2[%c0_83, %c0_84] : memref<8x128xf32, #tpu.memory_space<vmem>>, vector<8x128xf32>
      %c0_85 = arith.constant 0 : index
      %c0_86 = arith.constant 0 : index
      %142 = vector.load %arg7[%c0_85, %c0_86] : memref<8x128xf32, #tpu.memory_space<vmem>>, vector<8x128xf32>
      tpu.vector_store %arg7[%c0_85, %c0_86], %141 {strides = array<i32>} : memref<8x128xf32, #tpu.memory_space<vmem>>, vector<8x128xf32>,
      %c0_87 = arith.constant 0 : index
      %c0_88 = arith.constant 0 : index
      %143 = vector.load %arg3[%c0_87, %c0_88] : memref<8x128xf32, #tpu.memory_space<vmem>>, vector<8x128xf32>
      %c0_89 = arith.constant 0 : index
      %c0_90 = arith.constant 0 : index
      %144 = vector.load %arg9[%c0_89, %c0_90] : memref<8x128xf32, #tpu.memory_space<vmem>>, vector<8x128xf32>
      tpu.vector_store %arg9[%c0_89, %c0_90], %143 {strides = array<i32>} : memref<8x128xf32, #tpu.memory_space<vmem>>, vector<8x128xf32>,
      %c0_91 = arith.constant 0 : index
      %c0_92 = arith.constant 0 : index
      %145 = vector.load %arg4[%c0_91, %c0_92] : memref<8x128xf32, #tpu.memory_space<vmem>>, vector<8x128xf32>
      %c0_93 = arith.constant 0 : index
      %c0_94 = arith.constant 0 : index
      %146 = vector.load %arg8[%c0_93, %c0_94] : memref<8x128xf32, #tpu.memory_space<vmem>>, vector<8x128xf32>
      tpu.vector_store %arg8[%c0_93, %c0_94], %145 {strides = array<i32>} : memref<8x128xf32, #tpu.memory_space<vmem>>, vector<8x128xf32>,
      "tpu.region"() ({
        %147 = tpu.sem_alloc : memref<!tpu.dma_semaphore, #tpu.memory_space<semaphore_mem>>
        tpu.enqueue_dma source(%arg5 : memref<128x128xf32, #tpu.memory_space<any>>) target(%arg11 : memref<128x128xf32, #tpu.memory_space<vmem>>) target_semaphore(%147 : memref<!tpu.dma_semaphore, #tpu.memory_space<semaphore_mem>>)
        tpu.wait_dma2 semaphore(%147 : memref<!tpu.dma_semaphore, #tpu.memory_space<semaphore_mem>>) src(%arg5 : memref<128x128xf32, #tpu.memory_space<any>>) dst(%arg11 : memref<128x128xf32, #tpu.memory_space<vmem>>)
        tpu.yield
      }) : () -> ()
      "tpu.region"() ({
        %147 = tpu.sem_alloc : memref<!tpu.dma_semaphore, #tpu.memory_space<semaphore_mem>>
        tpu.enqueue_dma source(%arg6 : memref<128x128xf32, #tpu.memory_space<any>>) target(%arg12 : memref<128x128xf32, #tpu.memory_space<vmem>>) target_semaphore(%147 : memref<!tpu.dma_semaphore, #tpu.memory_space<semaphore_mem>>)
        tpu.wait_dma2 semaphore(%147 : memref<!tpu.dma_semaphore, #tpu.memory_space<semaphore_mem>>) src(%arg6 : memref<128x128xf32, #tpu.memory_space<any>>) dst(%arg12 : memref<128x128xf32, #tpu.memory_space<vmem>>)
        tpu.yield
      }) : () -> ()
    } else {
    }
    %c0 = arith.constant 0 : index
    %c0_1 = arith.constant 0 : index
    %3 = vector.load %arg1[%c0, %c0_1] : memref<64x128xf32, #tpu.memory_space<vmem>>, vector<64x128xf32>
    %c0_2 = arith.constant 0 : index
    %c0_3 = arith.constant 0 : index
    %4 = vector.load %arg12[%c0_2, %c0_3] : memref<128x128xf32, #tpu.memory_space<vmem>>, vector<128x128xf32>
    %cst = arith.constant dense<0.000000e+00> : vector<64x128xf32>
    %5 = tpu.matmul %3, %4, %cst {dimension_numbers = #tpu.dot_dimension_numbers<[1], [0], [0], [1], [0, 0, 1, 1], [], []>} : vector<64x128xf32>, vector<128x128xf32>, vector<64x128xf32> -> vector<64x128xf32>
    %c0_4 = arith.constant 0 : index
    %c0_5 = arith.constant 0 : index
    %6 = vector.load %arg10[%c0_4, %c0_5] : memref<64x128xf32, #tpu.memory_space<vmem>>, vector<64x128xf32>
    tpu.vector_store %arg10[%c0_4, %c0_5], %5 {strides = array<i32>} : memref<64x128xf32, #tpu.memory_space<vmem>>, vector<64x128xf32>,
    %c0_6 = arith.constant 0 : index
    %c0_7 = arith.constant 0 : index
    %7 = vector.load %arg7[%c0_6, %c0_7] : memref<8x128xf32, #tpu.memory_space<vmem>>, vector<8x128xf32>
    %c0_8 = arith.constant 0 : index
    %c0_9 = arith.constant 0 : index
    %8 = vector.load %arg9[%c0_8, %c0_9] : memref<8x128xf32, #tpu.memory_space<vmem>>, vector<8x128xf32>
    %c0_10 = arith.constant 0 : index
    %c0_11 = arith.constant 0 : index
    %9 = vector.load %arg8[%c0_10, %c0_11] : memref<8x128xf32, #tpu.memory_space<vmem>>, vector<8x128xf32>
    %c0_i32_12 = arith.constant 0 : i32
    %c8_i32 = arith.constant 8 : i32
    %10 = arith.muli %c0_i32_12, %c8_i32 : i32
    %11 = tpu.assume_multiple %10, 8 : i32
    %12 = arith.index_cast %11 : i32 to index
    %c0_13 = arith.constant 0 : index
    %13 = vector.load %arg10[%12, %c0_13] : memref<64x128xf32, #tpu.memory_space<vmem>>, vector<8x128xf32>
    %cst_14 = arith.constant -5.000000e-01 : f32
    %14 = vector.broadcast %cst_14 : f32 to vector<8x128xf32>
    %15 = arith.mulf %14, %9 : vector<8x128xf32>
    %c0_15 = arith.constant 0 : index
    %c0_16 = arith.constant 0 : index
    %16 = vector.load %arg11[%c0_15, %c0_16] : memref<128x128xf32, #tpu.memory_space<vmem>>, vector<128x128xf32>
    %cst_17 = arith.constant dense<0.000000e+00> : vector<8x128xf32>
    %17 = tpu.matmul %7, %16, %cst_17 {dimension_numbers = #tpu.dot_dimension_numbers<[1], [0], [0], [1], [0, 0, 1, 1], [], []>} : vector<8x128xf32>, vector<128x128xf32>, vector<8x128xf32> -> vector<8x128xf32>
    %18 = arith.addf %15, %17 : vector<8x128xf32>
    %19 = arith.addf %18, %13 : vector<8x128xf32>
    %20 = arith.subf %8, %9 : vector<8x128xf32>
    %cst_18 = arith.constant 1.000000e-01 : f32
    %21 = vector.broadcast %cst_18 : f32 to vector<8x128xf32>
    %22 = arith.mulf %21, %20 : vector<8x128xf32>
    %23 = arith.addf %9, %22 : vector<8x128xf32>
    %cst_19 = arith.constant 0.000000e+00 : f32
    %24 = vector.broadcast %cst_19 : f32 to vector<8x128xf32>
    %25 = arith.maximumf %19, %24 : vector<8x128xf32>
    %c1_i32 = arith.constant 1 : i32
    %c8_i32_20 = arith.constant 8 : i32
    %26 = arith.muli %c1_i32, %c8_i32_20 : i32
    %27 = tpu.assume_multiple %26, 8 : i32
    %28 = arith.index_cast %27 : i32 to index
    %c0_21 = arith.constant 0 : index
    %29 = vector.load %arg10[%28, %c0_21] : memref<64x128xf32, #tpu.memory_space<vmem>>, vector<8x128xf32>
    %cst_22 = arith.constant -5.000000e-01 : f32
    %30 = vector.broadcast %cst_22 : f32 to vector<8x128xf32>
    %31 = arith.mulf %30, %23 : vector<8x128xf32>
    %c0_23 = arith.constant 0 : index
    %c0_24 = arith.constant 0 : index
    %32 = vector.load %arg11[%c0_23, %c0_24] : memref<128x128xf32, #tpu.memory_space<vmem>>, vector<128x128xf32>
    %cst_25 = arith.constant dense<0.000000e+00> : vector<8x128xf32>
    %33 = tpu.matmul %25, %32, %cst_25 {dimension_numbers = #tpu.dot_dimension_numbers<[1], [0], [0], [1], [0, 0, 1, 1], [], []>} : vector<8x128xf32>, vector<128x128xf32>, vector<8x128xf32> -> vector<8x128xf32>
    %34 = arith.addf %31, %33 : vector<8x128xf32>
    %35 = arith.addf %34, %29 : vector<8x128xf32>
    %36 = arith.subf %19, %23 : vector<8x128xf32>
    %cst_26 = arith.constant 1.000000e-01 : f32
    %37 = vector.broadcast %cst_26 : f32 to vector<8x128xf32>
    %38 = arith.mulf %37, %36 : vector<8x128xf32>
    %39 = arith.addf %23, %38 : vector<8x128xf32>
    %cst_27 = arith.constant 0.000000e+00 : f32
    %40 = vector.broadcast %cst_27 : f32 to vector<8x128xf32>
    %41 = arith.maximumf %35, %40 : vector<8x128xf32>
    %c2_i32 = arith.constant 2 : i32
    %c8_i32_28 = arith.constant 8 : i32
    %42 = arith.muli %c2_i32, %c8_i32_28 : i32
    %43 = tpu.assume_multiple %42, 8 : i32
    %44 = arith.index_cast %43 : i32 to index
    %c0_29 = arith.constant 0 : index
    %45 = vector.load %arg10[%44, %c0_29] : memref<64x128xf32, #tpu.memory_space<vmem>>, vector<8x128xf32>
    %cst_30 = arith.constant -5.000000e-01 : f32
    %46 = vector.broadcast %cst_30 : f32 to vector<8x128xf32>
    %47 = arith.mulf %46, %39 : vector<8x128xf32>
    %c0_31 = arith.constant 0 : index
    %c0_32 = arith.constant 0 : index
    %48 = vector.load %arg11[%c0_31, %c0_32] : memref<128x128xf32, #tpu.memory_space<vmem>>, vector<128x128xf32>
    %cst_33 = arith.constant dense<0.000000e+00> : vector<8x128xf32>
    %49 = tpu.matmul %41, %48, %cst_33 {dimension_numbers = #tpu.dot_dimension_numbers<[1], [0], [0], [1], [0, 0, 1, 1], [], []>} : vector<8x128xf32>, vector<128x128xf32>, vector<8x128xf32> -> vector<8x128xf32>
    %50 = arith.addf %47, %49 : vector<8x128xf32>
    %51 = arith.addf %50, %45 : vector<8x128xf32>
    %52 = arith.subf %35, %39 : vector<8x128xf32>
    %cst_34 = arith.constant 1.000000e-01 : f32
    %53 = vector.broadcast %cst_34 : f32 to vector<8x128xf32>
    %54 = arith.mulf %53, %52 : vector<8x128xf32>
    %55 = arith.addf %39, %54 : vector<8x128xf32>
    %cst_35 = arith.constant 0.000000e+00 : f32
    %56 = vector.broadcast %cst_35 : f32 to vector<8x128xf32>
    %57 = arith.maximumf %51, %56 : vector<8x128xf32>
    %c3_i32 = arith.constant 3 : i32
    %c8_i32_36 = arith.constant 8 : i32
    %58 = arith.muli %c3_i32, %c8_i32_36 : i32
    %59 = tpu.assume_multiple %58, 8 : i32
    %60 = arith.index_cast %59 : i32 to index
    %c0_37 = arith.constant 0 : index
    %61 = vector.load %arg10[%60, %c0_37] : memref<64x128xf32, #tpu.memory_space<vmem>>, vector<8x128xf32>
    %cst_38 = arith.constant -5.000000e-01 : f32
    %62 = vector.broadcast %cst_38 : f32 to vector<8x128xf32>
    %63 = arith.mulf %62, %55 : vector<8x128xf32>
    %c0_39 = arith.constant 0 : index
    %c0_40 = arith.constant 0 : index
    %64 = vector.load %arg11[%c0_39, %c0_40] : memref<128x128xf32, #tpu.memory_space<vmem>>, vector<128x128xf32>
    %cst_41 = arith.constant dense<0.000000e+00> : vector<8x128xf32>
    %65 = tpu.matmul %57, %64, %cst_41 {dimension_numbers = #tpu.dot_dimension_numbers<[1], [0], [0], [1], [0, 0, 1, 1], [], []>} : vector<8x128xf32>, vector<128x128xf32>, vector<8x128xf32> -> vector<8x128xf32>
    %66 = arith.addf %63, %65 : vector<8x128xf32>
    %67 = arith.addf %66, %61 : vector<8x128xf32>
    %68 = arith.subf %51, %55 : vector<8x128xf32>
    %cst_42 = arith.constant 1.000000e-01 : f32
    %69 = vector.broadcast %cst_42 : f32 to vector<8x128xf32>
    %70 = arith.mulf %69, %68 : vector<8x128xf32>
    %71 = arith.addf %55, %70 : vector<8x128xf32>
    %cst_43 = arith.constant 0.000000e+00 : f32
    %72 = vector.broadcast %cst_43 : f32 to vector<8x128xf32>
    %73 = arith.maximumf %67, %72 : vector<8x128xf32>
    %c4_i32 = arith.constant 4 : i32
    %c8_i32_44 = arith.constant 8 : i32
    %74 = arith.muli %c4_i32, %c8_i32_44 : i32
    %75 = tpu.assume_multiple %74, 8 : i32
    %76 = arith.index_cast %75 : i32 to index
    %c0_45 = arith.constant 0 : index
    %77 = vector.load %arg10[%76, %c0_45] : memref<64x128xf32, #tpu.memory_space<vmem>>, vector<8x128xf32>
    %cst_46 = arith.constant -5.000000e-01 : f32
    %78 = vector.broadcast %cst_46 : f32 to vector<8x128xf32>
    %79 = arith.mulf %78, %71 : vector<8x128xf32>
    %c0_47 = arith.constant 0 : index
    %c0_48 = arith.constant 0 : index
    %80 = vector.load %arg11[%c0_47, %c0_48] : memref<128x128xf32, #tpu.memory_space<vmem>>, vector<128x128xf32>
    %cst_49 = arith.constant dense<0.000000e+00> : vector<8x128xf32>
    %81 = tpu.matmul %73, %80, %cst_49 {dimension_numbers = #tpu.dot_dimension_numbers<[1], [0], [0], [1], [0, 0, 1, 1], [], []>} : vector<8x128xf32>, vector<128x128xf32>, vector<8x128xf32> -> vector<8x128xf32>
    %82 = arith.addf %79, %81 : vector<8x128xf32>
    %83 = arith.addf %82, %77 : vector<8x128xf32>
    %84 = arith.subf %67, %71 : vector<8x128xf32>
    %cst_50 = arith.constant 1.000000e-01 : f32
    %85 = vector.broadcast %cst_50 : f32 to vector<8x128xf32>
    %86 = arith.mulf %85, %84 : vector<8x128xf32>
    %87 = arith.addf %71, %86 : vector<8x128xf32>
    %cst_51 = arith.constant 0.000000e+00 : f32
    %88 = vector.broadcast %cst_51 : f32 to vector<8x128xf32>
    %89 = arith.maximumf %83, %88 : vector<8x128xf32>
    %c5_i32 = arith.constant 5 : i32
    %c8_i32_52 = arith.constant 8 : i32
    %90 = arith.muli %c5_i32, %c8_i32_52 : i32
    %91 = tpu.assume_multiple %90, 8 : i32
    %92 = arith.index_cast %91 : i32 to index
    %c0_53 = arith.constant 0 : index
    %93 = vector.load %arg10[%92, %c0_53] : memref<64x128xf32, #tpu.memory_space<vmem>>, vector<8x128xf32>
    %cst_54 = arith.constant -5.000000e-01 : f32
    %94 = vector.broadcast %cst_54 : f32 to vector<8x128xf32>
    %95 = arith.mulf %94, %87 : vector<8x128xf32>
    %c0_55 = arith.constant 0 : index
    %c0_56 = arith.constant 0 : index
    %96 = vector.load %arg11[%c0_55, %c0_56] : memref<128x128xf32, #tpu.memory_space<vmem>>, vector<128x128xf32>
    %cst_57 = arith.constant dense<0.000000e+00> : vector<8x128xf32>
    %97 = tpu.matmul %89, %96, %cst_57 {dimension_numbers = #tpu.dot_dimension_numbers<[1], [0], [0], [1], [0, 0, 1, 1], [], []>} : vector<8x128xf32>, vector<128x128xf32>, vector<8x128xf32> -> vector<8x128xf32>
    %98 = arith.addf %95, %97 : vector<8x128xf32>
    %99 = arith.addf %98, %93 : vector<8x128xf32>
    %100 = arith.subf %83, %87 : vector<8x128xf32>
    %cst_58 = arith.constant 1.000000e-01 : f32
    %101 = vector.broadcast %cst_58 : f32 to vector<8x128xf32>
    %102 = arith.mulf %101, %100 : vector<8x128xf32>
    %103 = arith.addf %87, %102 : vector<8x128xf32>
    %cst_59 = arith.constant 0.000000e+00 : f32
    %104 = vector.broadcast %cst_59 : f32 to vector<8x128xf32>
    %105 = arith.maximumf %99, %104 : vector<8x128xf32>
    %c6_i32 = arith.constant 6 : i32
    %c8_i32_60 = arith.constant 8 : i32
    %106 = arith.muli %c6_i32, %c8_i32_60 : i32
    %107 = tpu.assume_multiple %106, 8 : i32
    %108 = arith.index_cast %107 : i32 to index
    %c0_61 = arith.constant 0 : index
    %109 = vector.load %arg10[%108, %c0_61] : memref<64x128xf32, #tpu.memory_space<vmem>>, vector<8x128xf32>
    %cst_62 = arith.constant -5.000000e-01 : f32
    %110 = vector.broadcast %cst_62 : f32 to vector<8x128xf32>
    %111 = arith.mulf %110, %103 : vector<8x128xf32>
    %c0_63 = arith.constant 0 : index
    %c0_64 = arith.constant 0 : index
    %112 = vector.load %arg11[%c0_63, %c0_64] : memref<128x128xf32, #tpu.memory_space<vmem>>, vector<128x128xf32>
    %cst_65 = arith.constant dense<0.000000e+00> : vector<8x128xf32>
    %113 = tpu.matmul %105, %112, %cst_65 {dimension_numbers = #tpu.dot_dimension_numbers<[1], [0], [0], [1], [0, 0, 1, 1], [], []>} : vector<8x128xf32>, vector<128x128xf32>, vector<8x128xf32> -> vector<8x128xf32>
    %114 = arith.addf %111, %113 : vector<8x128xf32>
    %115 = arith.addf %114, %109 : vector<8x128xf32>
    %116 = arith.subf %99, %103 : vector<8x128xf32>
    %cst_66 = arith.constant 1.000000e-01 : f32
    %117 = vector.broadcast %cst_66 : f32 to vector<8x128xf32>
    %118 = arith.mulf %117, %116 : vector<8x128xf32>
    %119 = arith.addf %103, %118 : vector<8x128xf32>
    %cst_67 = arith.constant 0.000000e+00 : f32
    %120 = vector.broadcast %cst_67 : f32 to vector<8x128xf32>
    %121 = arith.maximumf %115, %120 : vector<8x128xf32>
    %c7_i32 = arith.constant 7 : i32
    %c8_i32_68 = arith.constant 8 : i32
    %122 = arith.muli %c7_i32, %c8_i32_68 : i32
    %123 = tpu.assume_multiple %122, 8 : i32
    %124 = arith.index_cast %123 : i32 to index
    %c0_69 = arith.constant 0 : index
    %125 = vector.load %arg10[%124, %c0_69] : memref<64x128xf32, #tpu.memory_space<vmem>>, vector<8x128xf32>
    %cst_70 = arith.constant -5.000000e-01 : f32
    %126 = vector.broadcast %cst_70 : f32 to vector<8x128xf32>
    %127 = arith.mulf %126, %119 : vector<8x128xf32>
    %c0_71 = arith.constant 0 : index
    %c0_72 = arith.constant 0 : index
    %128 = vector.load %arg11[%c0_71, %c0_72] : memref<128x128xf32, #tpu.memory_space<vmem>>, vector<128x128xf32>
    %cst_73 = arith.constant dense<0.000000e+00> : vector<8x128xf32>
    %129 = tpu.matmul %121, %128, %cst_73 {dimension_numbers = #tpu.dot_dimension_numbers<[1], [0], [0], [1], [0, 0, 1, 1], [], []>} : vector<8x128xf32>, vector<128x128xf32>, vector<8x128xf32> -> vector<8x128xf32>
    %130 = arith.addf %127, %129 : vector<8x128xf32>
    %131 = arith.addf %130, %125 : vector<8x128xf32>
    %132 = arith.subf %115, %119 : vector<8x128xf32>
    %cst_74 = arith.constant 1.000000e-01 : f32
    %133 = vector.broadcast %cst_74 : f32 to vector<8x128xf32>
    %134 = arith.mulf %133, %132 : vector<8x128xf32>
    %135 = arith.addf %119, %134 : vector<8x128xf32>
    %cst_75 = arith.constant 0.000000e+00 : f32
    %136 = vector.broadcast %cst_75 : f32 to vector<8x128xf32>
    %137 = arith.maximumf %131, %136 : vector<8x128xf32>
    %c8_i32_76 = arith.constant 8 : i32
    %c0_77 = arith.constant 0 : index
    %c0_78 = arith.constant 0 : index
    %138 = vector.load %arg7[%c0_77, %c0_78] : memref<8x128xf32, #tpu.memory_space<vmem>>, vector<8x128xf32>
    tpu.vector_store %arg7[%c0_77, %c0_78], %137 {strides = array<i32>} : memref<8x128xf32, #tpu.memory_space<vmem>>, vector<8x128xf32>,
    %c0_79 = arith.constant 0 : index
    %c0_80 = arith.constant 0 : index
    %139 = vector.load %arg9[%c0_79, %c0_80] : memref<8x128xf32, #tpu.memory_space<vmem>>, vector<8x128xf32>
    tpu.vector_store %arg9[%c0_79, %c0_80], %131 {strides = array<i32>} : memref<8x128xf32, #tpu.memory_space<vmem>>, vector<8x128xf32>,
    %c0_81 = arith.constant 0 : index
    %c0_82 = arith.constant 0 : index
    %140 = vector.load %arg8[%c0_81, %c0_82] : memref<8x128xf32, #tpu.memory_space<vmem>>, vector<8x128xf32>
    tpu.vector_store %arg8[%c0_81, %c0_82], %135 {strides = array<i32>} : memref<8x128xf32, #tpu.memory_space<vmem>>, vector<8x128xf32>,
    return
  }
  func.func @transform_0(%arg0: i32) -> (i32, i32) {
    %c0_i32 = arith.constant 0 : i32
    %c0_i32_0 = arith.constant 0 : i32
    return %arg0, %c0_i32 : i32, i32
  }
  func.func @transform_1(%arg0: i32) -> (i32, i32) {
    %c0_i32 = arith.constant 0 : i32
    %c0_i32_0 = arith.constant 0 : i32
    %c0_i32_1 = arith.constant 0 : i32
    return %c0_i32, %c0_i32_0 : i32, i32
  }
  func.func @transform_2(%arg0: i32) -> (i32, i32) {
    %c0_i32 = arith.constant 0 : i32
    %c0_i32_0 = arith.constant 0 : i32
    %c0_i32_1 = arith.constant 0 : i32
    return %c0_i32, %c0_i32_0 : i32, i32
  }
  func.func @transform_3(%arg0: i32) -> (i32, i32) {
    %c0_i32 = arith.constant 0 : i32
    %c0_i32_0 = arith.constant 0 : i32
    %c0_i32_1 = arith.constant 0 : i32
    return %c0_i32, %c0_i32_0 : i32, i32
  }
  func.func @transform_6(%arg0: i32) -> (i32, i32) {
    %c0_i32 = arith.constant 0 : i32
    %c0_i32_0 = arith.constant 0 : i32
    %c0_i32_1 = arith.constant 0 : i32
    return %c0_i32, %c0_i32_0 : i32, i32
  }
  func.func @transform_7(%arg0: i32) -> (i32, i32) {
    %c0_i32 = arith.constant 0 : i32
    %c0_i32_0 = arith.constant 0 : i32
    %c0_i32_1 = arith.constant 0 : i32
    return %c0_i32, %c0_i32_0 : i32, i32
  }
}

</mosaic_0001>

<bundles_post_ra>
// kernel: tpu_custom_call.1
= control target key start
LH: loop header
LB: loop body
LE: loop exit
PB: predicated region body
PF: predicated region fallthrough
CT: control target
= control target key end

     0   :  { %13 = vsyncpa [#allocation7], 0  ;;  %s936_s0 = inlined_call_operand.hbm [shape: f32[64,128], index: 0, kind: input, shape index: {}]   ;;  %s937_s1 = inlined_call_operand.hbm [shape: f32[8,128], index: 1, kind: input, shape index: {}]   ;;  %s938_s2 = inlined_call_operand.hbm [shape: f32[8,128], index: 2, kind: input, shape index: {}]   ;;  %s939_s3 = inlined_call_operand.hbm [shape: f32[8,128], index: 3, kind: input, shape index: {}]   ;;  %s940_s4 = inlined_call_operand.hbm [shape: f32[128,128], index: 4, kind: input, shape index: {}]   ;;  %s941_s5 = inlined_call_operand.hbm [shape: f32[128,128], index: 5, kind: input, shape index: {}]   ;;  %s942_s6 = inlined_call_operand.hbm [shape: f32[8,128], index: 6, kind: output, shape index: {0}]   ;;  %s943_s7 = inlined_call_operand.hbm [shape: f32[8,128], index: 7, kind: output, shape index: {1}]  }
   0x1   :  { %14 = vsyncpa [#allocation10], 0 }
   0x2   :  { %15 = vsyncpa [#allocation13], 0 }
   0x3   :  { %16 = vsyncpa [#allocation8], 0  ;;  %s36_s26 = sshll.u32 %s937_s1, 4  ;;  %s37_s26 = int_to_ptr.hbm [resolvable:$true] %s36_s26 }
   0x4   :  { %17 = vsyncpa [#allocation16], 0  ;;  %s699_s27 = smov [#allocation9]   ;;  %s22_s8 = sshll.u32 %s936_s0, 4  ;;  %s23_s8 = int_to_ptr.hbm [resolvable:$true] %s22_s8 }
   0x5   :  { %s38_s28 = sshll.u32 %s699_s27, 4  ;;  %s700_s9 = smov [#allocation6]   ;;  %s39_s28 = int_to_ptr.vmem [resolvable:$true] %s38_s28 }
   0x6   :  { %41 = dma.hbm_to_vmem [thread:$0]  %s37_s26, 128, %s39_s28, [#allocation10]  }
   0x7   :  { %s24_s10 = sshll.u32 %s700_s9, 4  ;;  %s701_s11 = smov 128   ;;  %s25_s10 = int_to_ptr.vmem [resolvable:$true] %s24_s10 }
   0x8   :  { %s702_s12 = smov 8   ;;  %s47_s1 = sshll.u32 %s938_s2, 4  ;;  %s48_s1 = int_to_ptr.hbm [resolvable:$true] %s47_s1 }
   0x9   :  { %30 = dma.hbm_to_vmem [thread:$0]  %s23_s8, 1024, %s25_s10, [#allocation7], %s701_s11, %s701_s11, %s702_s12  }
   0xa   :  { %s703_s15 = smov [#allocation11]   ;;  %s58_s0 = sshll.u32 %s939_s3, 4  ;;  %s59_s0 = int_to_ptr.hbm [resolvable:$true] %s58_s0 }
   0xb   :  { %s49_s16 = sshll.u32 %s703_s15, 4  ;;  %s704_s19 = smov [#allocation12]   ;;  %s50_s16 = int_to_ptr.vmem [resolvable:$true] %s49_s16 }
   0xc   :  { %52 = dma.hbm_to_vmem [thread:$0]  %s48_s1, 128, %s50_s16, [#allocation10]  }
   0xd   :  { %s60_s20 = sshll.u32 %s704_s19, 4  ;;  %s61_s20 = int_to_ptr.vmem [resolvable:$true] %s60_s20 }
   0xe   :  { %63 = dma.hbm_to_vmem [thread:$0]  %s59_s0, 128, %s61_s20, [#allocation13]  }
   0xf   :  { %685 = dma.done.wait [#allocation7], 1024  }
  0x10   :  { %686 = vsyncadd [#allocation7], 4294966272 }
  0x11   :  { %687 = dma.done.wait [#allocation10], 256  }
  0x12   :  { %688 = vsyncadd [#allocation10], 4294967040 }
  0x13   :  { %689 = dma.done.wait [#allocation13], 128  }
  0x14   :  { %690 = vsyncadd [#allocation13], 4294967168  ;;  %v761_v0 = vld [vmem:[#allocation11] sm:$0xff]  ;;  %v84_v1 = vld [vmem:[#allocation9] sm:$0xff] }
  0x15   :  { %v88_v2 = vld [vmem:[#allocation12] sm:$0xff]  ;;  %85 = vst [vmem:[#allocation14] sm:$0xff] %v84_v1 }
  0x16   :  { %89 = vst [vmem:[#allocation15] sm:$0xff] %v88_v2 }
  0x17   :  { %s97_s21 = sshll.u32 %s940_s4, 4  ;;  %s705_s22 = smov [#allocation4]   ;;  %s98_s21 = int_to_ptr.hbm [resolvable:$true] %s97_s21 }
  0x18   :  { %s99_s23 = sshll.u32 %s705_s22, 4  ;;  %s100_s23 = int_to_ptr.vmem [resolvable:$true] %s99_s23 }
  0x19   :  { %102 = dma.hbm_to_vmem [thread:$0]  %s98_s21, 2048, %s100_s23, [#allocation17] }
  0x1a   :  { %691 = dma.done.wait [#allocation17], 2048 }
  0x1b   :  { %692 = vsyncadd [#allocation17], 4294965248 }
  0x1c   :  { %s113_s26 = sshll.u32 %s941_s5, 4  ;;  %s706_s27 = smov [#allocation5]   ;;  %s114_s26 = int_to_ptr.hbm [resolvable:$true] %s113_s26 }
  0x1d   :  { %s115_s28 = sshll.u32 %s706_s27, 4  ;;  %s116_s28 = int_to_ptr.vmem [resolvable:$true] %s115_s28 }
  0x1e   :  { %118 = dma.hbm_to_vmem [thread:$0]  %s114_s26, 2048, %s116_s28, [#allocation22] }
  0x1f   :  { %693 = dma.done.wait [#allocation22], 2048 }
  0x20   :  { %694 = vsyncadd [#allocation22], 4294965248  ;;  %v769_v3 = vld [vmem:[#allocation4 + $0x78] sm:$0xff]  ;;  %v771_v5 = vld [vmem:[#allocation4 + $0x70] sm:$0xff]  ;;  %s707_s4 = smov [#allocation15]   ;;  %s466_s8 = sshll.u32 %s943_s7, 4  ;;  %s467_s8 = int_to_ptr.hbm [resolvable:$true] %s466_s8 }
  0x21   :  { %v145_v4 = vld [vmem:[#allocation5 + $0x78] sm:$0xff]  ;;  %216 = vmatpush.msra.mxu1 %v769_v3  ;;  %v144_v6 = vld [vmem:[#allocation5 + $0x70] sm:$0xff]  ;;  %v774_v7 = vld [vmem:[#allocation4 + $0x68] sm:$0xff]  ;;  %245 = vmatpush.msra.mxu2 %v769_v3  ;;  %s464_s5 = sshll.u32 %s707_s4, 4  ;;  %s708_s9 = smov [#allocation14]   ;;  %s465_s5 = int_to_ptr.vmem [resolvable:$true] %s464_s5 }
  0x22   :  { %146 = vmatpush.msra.mxu0 %v145_v4  ;;  %v143_v8 = vld [vmem:[#allocation5 + $0x68] sm:$0xff]  ;;  %274 = vmatpush.msra.mxu3 %v769_v3  ;;  %v779_v9 = vld [vmem:[#allocation4 + $0x60] sm:$0xff]  ;;  %v784_v11 = vld [vmem:[#allocation4 + $0x58] sm:$0xff]  ;;  %s453_s10 = sshll.u32 %s708_s9, 4  ;;  %s455_s13 = sshll.u32 %s942_s6, 4  ;;  %s454_s10 = int_to_ptr.vmem [resolvable:$true] %s453_s10  ;;  %s456_s13 = int_to_ptr.hbm [resolvable:$true] %s455_s13 }
  0x23   :  { %217 = vmatpush.msra.mxu1 %v771_v5  ;;  %v142_v10 = vld [vmem:[#allocation5 + $0x60] sm:$0xff]  ;;  %246 = vmatpush.msra.mxu2 %v771_v5  ;;  %v141_v12 = vld [vmem:[#allocation5 + $0x58] sm:$0xff]  ;;  %v789_v13 = vld [vmem:[#allocation4 + $0x50] sm:$0xff] }
  0x24   :  { %147 = vmatpush.msra.mxu0 %v144_v6  ;;  %275 = vmatpush.msra.mxu3 %v771_v5  ;;  %v140_v14 = vld [vmem:[#allocation5 + $0x50] sm:$0xff]  ;;  %v794_v15 = vld [vmem:[#allocation4 + $0x48] sm:$0xff]  ;;  %v799_v17 = vld [vmem:[#allocation4 + $0x40] sm:$0xff] }
  0x25   :  { %218 = vmatpush.msra.mxu1 %v774_v7  ;;  %247 = vmatpush.msra.mxu2 %v774_v7  ;;  %v139_v16 = vld [vmem:[#allocation5 + $0x48] sm:$0xff]  ;;  %v138_v18 = vld [vmem:[#allocation5 + $0x40] sm:$0xff]  ;;  %v804_v19 = vld [vmem:[#allocation4 + $0x38] sm:$0xff] }
  0x26   :  { %148 = vmatpush.msra.mxu0 %v143_v8  ;;  %276 = vmatpush.msra.mxu3 %v774_v7  ;;  %v137_v20 = vld [vmem:[#allocation5 + $0x38] sm:$0xff]  ;;  %v809_v21 = vld [vmem:[#allocation4 + $0x30] sm:$0xff]  ;;  %v814_v23 = vld [vmem:[#allocation4 + $0x28] sm:$0xff] }
  0x27   :  { %219 = vmatpush.msra.mxu1 %v779_v9  ;;  %248 = vmatpush.msra.mxu2 %v779_v9  ;;  %v136_v22 = vld [vmem:[#allocation5 + $0x30] sm:$0xff]  ;;  %v135_v24 = vld [vmem:[#allocation5 + $0x28] sm:$0xff]  ;;  %v819_v25 = vld [vmem:[#allocation4 + $0x20] sm:$0xff] }
  0x28   :  { %149 = vmatpush.msra.mxu0 %v142_v10  ;;  %277 = vmatpush.msra.mxu3 %v779_v9  ;;  %v134_v26 = vld [vmem:[#allocation5 + $0x20] sm:$0xff]  ;;  %v824_v27 = vld [vmem:[#allocation4 + $0x18] sm:$0xff]  ;;  %v829_v29 = vld [vmem:[#allocation4 + $0x10] sm:$0xff] }
  0x29   :  { %220 = vmatpush.msra.mxu1 %v784_v11  ;;  %249 = vmatpush.msra.mxu2 %v784_v11  ;;  %v133_v28 = vld [vmem:[#allocation5 + $0x18] sm:$0xff]  ;;  %v132_v30 = vld [vmem:[#allocation5 + $0x10] sm:$0xff]  ;;  %v834_v31 = vld [vmem:[#allocation4 + $0x8] sm:$0xff] }
  0x2a   :  { %150 = vmatpush.msra.mxu0 %v141_v12  ;;  %278 = vmatpush.msra.mxu3 %v784_v11  ;;  %v131_v32 = vld [vmem:[#allocation5 + $0x8] sm:$0xff]  ;;  %v839_v33 = vld [vmem:[#allocation4] sm:$0xff]  ;;  %v195_v35 = vld [vmem:[#allocation14] sm:$0xff] }
  0x2b   :  { %221 = vmatpush.msra.mxu1 %v789_v13  ;;  %250 = vmatpush.msra.mxu2 %v789_v13  ;;  %v130_v34 = vld [vmem:[#allocation5] sm:$0xff]  ;;  %v123_v37 = vld [vmem:[#allocation6 + $0x8] sm:$0xff]  ;;  %v124_v51 = vld [vmem:[#allocation6 + $0x10] sm:$0xff] }
  0x2c   :  { %151 = vmatpush.msra.mxu0 %v140_v14  ;;  %279 = vmatpush.msra.mxu3 %v789_v13  ;;  %v122_v36 = vld [vmem:[#allocation6] sm:$0xff]  ;;  %v125_v58 = vld [vmem:[#allocation6 + $0x18] sm:$0xff]  ;;  %v128_v12 = vld [vmem:[#allocation6 + $0x30] sm:$0xff] }
  0x2d   :  { %222 = vmatpush.msra.mxu1 %v794_v15  ;;  %251 = vmatpush.msra.mxu2 %v794_v15  ;;  %v197_v38 = vld [vmem:[#allocation15] sm:$0xff] }
  0x2e   :  { %152 = vmatpush.msra.mxu0 %v139_v16  ;;  %280 = vmatpush.msra.mxu3 %v794_v15  ;;  %v238_v39 = vsub.f32 %v761_v0, %v197_v38  ;;  %v199_v40 = vmul.f32 -0.5, %v197_v38  ;;  %v126_v1 = vld [vmem:[#allocation6 + $0x20] sm:$0xff] }
  0x2f   :  { %223 = vmatpush.msra.mxu1 %v799_v17  ;;  %252 = vmatpush.msra.mxu2 %v799_v17 }
  0x30   :  { %153 = vmatpush.msra.mxu0 %v138_v18  ;;  %281 = vmatpush.msra.mxu3 %v799_v17  ;;  %v239_v41 = vmul.f32 0.1, %v238_v39 }
  0x31   :  { %224 = vmatpush.msra.mxu1 %v804_v19  ;;  %253 = vmatpush.msra.mxu2 %v804_v19 }
  0x32   :  { %154 = vmatpush.msra.mxu0 %v137_v20  ;;  %282 = vmatpush.msra.mxu3 %v804_v19  ;;  %v240_v45 = vadd.f32 %v239_v41, %v197_v38 }
  0x33   :  { %225 = vmatpush.msra.mxu1 %v809_v21  ;;  %254 = vmatpush.msra.mxu2 %v809_v21 }
  0x34   :  { %155 = vmatpush.msra.mxu0 %v136_v22  ;;  %283 = vmatpush.msra.mxu3 %v809_v21  ;;  %v244_v52 = vmul.f32 -0.5, %v240_v45 }
  0x35   :  { %226 = vmatpush.msra.mxu1 %v814_v23  ;;  %255 = vmatpush.msra.mxu2 %v814_v23 }
  0x36   :  { %156 = vmatpush.msra.mxu0 %v135_v24  ;;  %284 = vmatpush.msra.mxu3 %v814_v23 }
  0x37   :  { %227 = vmatpush.msra.mxu1 %v819_v25  ;;  %256 = vmatpush.msra.mxu2 %v819_v25 }
  0x38   :  { %157 = vmatpush.msra.mxu0 %v134_v26  ;;  %285 = vmatpush.msra.mxu3 %v819_v25 }
  0x39   :  { %228 = vmatpush.msra.mxu1 %v824_v27  ;;  %257 = vmatpush.msra.mxu2 %v824_v27 }
  0x3a   :  { %158 = vmatpush.msra.mxu0 %v133_v28  ;;  %286 = vmatpush.msra.mxu3 %v824_v27 }
  0x3b   :  { %229 = vmatpush.msra.mxu1 %v829_v29  ;;  %258 = vmatpush.msra.mxu2 %v829_v29 }
  0x3c   :  { %159 = vmatpush.msra.mxu0 %v132_v30  ;;  %287 = vmatpush.msra.mxu3 %v829_v29 }
  0x3d   :  { %230 = vmatpush.msra.mxu1 %v834_v31  ;;  %259 = vmatpush.msra.mxu2 %v834_v31 }
  0x3e   :  { %160 = vmatpush.msra.mxu0 %v131_v32  ;;  %288 = vmatpush.msra.mxu3 %v834_v31 }
  0x3f   :  { %231 = vmatpush.msra.mxu1 %v839_v33  ;;  %260 = vmatpush.msra.mxu2 %v839_v33 }
  0x40   :  { %161 = vmatpush.msra.mxu0 %v130_v34  ;;  %232 = vmatmul.f32.vlgmr.msra.gmra.mxu1 %v195_v35 }
  0x41   :  { %162 = vmatmul.f32.vlgmr.msra.gmra.mxu0 %v122_v36  ;;  %289 = vmatpush.msra.mxu3 %v839_v33 }
  0x42   :  { %303 = vmatpush.msrb.mxu1 %v769_v3  ;;  %332 = vmatpush.msrb.mxu2 %v769_v3 }
  0x43   :  { %361 = vmatpush.msrb.mxu3 %v769_v3  ;;  %390 = vmatpush.msrb.mxu0 %v769_v3 }
  0x44   :  { %304 = vmatpush.msrb.mxu1 %v771_v5  ;;  %333 = vmatpush.msrb.mxu2 %v771_v5 }
  0x45   :  { %362 = vmatpush.msrb.mxu3 %v771_v5  ;;  %391 = vmatpush.msrb.mxu0 %v771_v5 }
  0x46   :  { %305 = vmatpush.msrb.mxu1 %v774_v7  ;;  %334 = vmatpush.msrb.mxu2 %v774_v7 }
  0x47   :  { %363 = vmatpush.msrb.mxu3 %v774_v7  ;;  %392 = vmatpush.msrb.mxu0 %v774_v7 }
  0x48   :  { %306 = vmatpush.msrb.mxu1 %v779_v9  ;;  %335 = vmatpush.msrb.mxu2 %v779_v9 }
  0x49   :  { %364 = vmatpush.msrb.mxu3 %v779_v9  ;;  %393 = vmatpush.msrb.mxu0 %v779_v9 }
  0x4a   :  { %307 = vmatpush.msrb.mxu1 %v784_v11  ;;  %336 = vmatpush.msrb.mxu2 %v784_v11 }
  0x4b   :  { %365 = vmatpush.msrb.mxu3 %v784_v11  ;;  %394 = vmatpush.msrb.mxu0 %v784_v11 }
  0x4c   :  { %308 = vmatpush.msrb.mxu1 %v789_v13  ;;  %337 = vmatpush.msrb.mxu2 %v789_v13 }
  0x4d   :  { %366 = vmatpush.msrb.mxu3 %v789_v13  ;;  %395 = vmatpush.msrb.mxu0 %v789_v13 }
  0x4e   :  { %309 = vmatpush.msrb.mxu1 %v794_v15  ;;  %338 = vmatpush.msrb.mxu2 %v794_v15 }
  0x4f   :  { %367 = vmatpush.msrb.mxu3 %v794_v15  ;;  %396 = vmatpush.msrb.mxu0 %v794_v15 }
  0x50   :  { %310 = vmatpush.msrb.mxu1 %v799_v17  ;;  %339 = vmatpush.msrb.mxu2 %v799_v17 }
  0x51   :  { %368 = vmatpush.msrb.mxu3 %v799_v17  ;;  %397 = vmatpush.msrb.mxu0 %v799_v17 }
  0x52   :  { %311 = vmatpush.msrb.mxu1 %v804_v19  ;;  %340 = vmatpush.msrb.mxu2 %v804_v19 }
  0x53   :  { %369 = vmatpush.msrb.mxu3 %v804_v19  ;;  %398 = vmatpush.msrb.mxu0 %v804_v19 }
  0x54   :  { %312 = vmatpush.msrb.mxu1 %v809_v21  ;;  %341 = vmatpush.msrb.mxu2 %v809_v21 }
  0x55   :  { %370 = vmatpush.msrb.mxu3 %v809_v21  ;;  %399 = vmatpush.msrb.mxu0 %v809_v21 }
  0x56   :  { %313 = vmatpush.msrb.mxu1 %v814_v23  ;;  %342 = vmatpush.msrb.mxu2 %v814_v23 }
  0x57   :  { %371 = vmatpush.msrb.mxu3 %v814_v23  ;;  %400 = vmatpush.msrb.mxu0 %v814_v23 }
  0x58   :  { %314 = vmatpush.msrb.mxu1 %v819_v25  ;;  %343 = vmatpush.msrb.mxu2 %v819_v25 }
  0x59   :  { %372 = vmatpush.msrb.mxu3 %v819_v25  ;;  %401 = vmatpush.msrb.mxu0 %v819_v25 }
  0x5a   :  { %315 = vmatpush.msrb.mxu1 %v824_v27  ;;  %344 = vmatpush.msrb.mxu2 %v824_v27 }
  0x5b   :  { %373 = vmatpush.msrb.mxu3 %v824_v27  ;;  %402 = vmatpush.msrb.mxu0 %v824_v27 }
  0x5c   :  { %316 = vmatpush.msrb.mxu1 %v829_v29  ;;  %345 = vmatpush.msrb.mxu2 %v829_v29 }
  0x5d   :  { %374 = vmatpush.msrb.mxu3 %v829_v29  ;;  %403 = vmatpush.msrb.mxu0 %v829_v29 }
  0x5e   :  { %317 = vmatpush.msrb.mxu1 %v834_v31  ;;  %346 = vmatpush.msrb.mxu2 %v834_v31 }
  0x5f   :  { %375 = vmatpush.msrb.mxu3 %v834_v31  ;;  %404 = vmatpush.msrb.mxu0 %v834_v31 }
  0x60   :  { %318 = vmatpush.msrb.mxu1 %v839_v33  ;;  %347 = vmatpush.msrb.mxu2 %v839_v33 }
  0x61   :  { %376 = vmatpush.msrb.mxu3 %v839_v33  ;;  %405 = vmatpush.msrb.mxu0 %v839_v33 }
  0x62   :  { %419 = vmatpush.msra.mxu1 %v769_v3  ;;  %165 = vmatmul.f32.gmra.mxu0 %v123_v37 }
  0x64   :  { %420 = vmatpush.msra.mxu1 %v771_v5 }
  0x66   :  { %421 = vmatpush.msra.mxu1 %v774_v7 }
  0x68   :  { %422 = vmatpush.msra.mxu1 %v779_v9 }
  0x6a   :  { %423 = vmatpush.msra.mxu1 %v784_v11  ;;  %168 = vmatmul.f32.gmra.mxu0 %v124_v51  ;;  %v127_v11 = vld [vmem:[#allocation6 + $0x28] sm:$0xff] }
  0x6c   :  { %424 = vmatpush.msra.mxu1 %v789_v13 }
  0x6e   :  { %425 = vmatpush.msra.mxu1 %v794_v15  ;;  %v129_v15 = vld [vmem:[#allocation6 + $0x38] sm:$0xff] }
  0x70   :  { %426 = vmatpush.msra.mxu1 %v799_v17 }
  0x72   :  { %427 = vmatpush.msra.mxu1 %v804_v19  ;;  %171 = vmatmul.f32.gmra.mxu0 %v125_v58 }
  0x74   :  { %428 = vmatpush.msra.mxu1 %v809_v21 }
  0x76   :  { %429 = vmatpush.msra.mxu1 %v814_v23 }
  0x78   :  { %430 = vmatpush.msra.mxu1 %v819_v25 }
  0x7a   :  { %431 = vmatpush.msra.mxu1 %v824_v27  ;;  %174 = vmatmul.f32.gmra.mxu0 %v126_v1 }
  0x7c   :  { %432 = vmatpush.msra.mxu1 %v829_v29 }
  0x7e   :  { %433 = vmatpush.msra.mxu1 %v834_v31 }
  0x80   :  { %434 = vmatpush.msra.mxu1 %v839_v33 }
  0x82   :  { %177 = vmatmul.f32.gmra.mxu0 %v127_v11 }
  0x8a   :  { %180 = vmatmul.f32.gmra.mxu0 %v128_v12 }
  0x92   :  { %183 = vmatmul.f32.gmra.mxu0 %v129_v15 }
  0xbd   :  { %v233_v42 = vpop.f32.mrf.mxu1 }
  0xbe   :  { %v163_v43 = vpop.f32.mrf.mxu0  ;;  %v236_v44 = vadd.f32 %v233_v42, %v199_v40 }
  0xc0   :  { %v237_v46 = vadd.f32 %v236_v44, %v163_v43 }
  0xc2   :  { %v267_v47 = vsub.f32 %v237_v46, %v240_v45  ;;  %v241_v48 = vmax.f32 %v237_v46, 0.0 }
  0xc4   :  { %v268_v49 = vmul.f32 0.1, %v267_v47  ;;  %261 = vmatmul.f32.vlgmr.msra.gmra.mxu2 %v241_v48 }
  0xc6   :  { %v269_v50 = vadd.f32 %v268_v49, %v240_v45 }
  0xc8   :  { %v273_v59 = vmul.f32 -0.5, %v269_v50 }
  0xdf   :  { %v166_v54 = vpop.f32.mrf.mxu0 }
  0xe7   :  { %v169_v61 = vpop.f32.mrf.mxu0 }
  0xef   :  { %v172_v7 = vpop.f32.mrf.mxu0 }
  0xf7   :  { %v175_v19 = vpop.f32.mrf.mxu0 }
  0xff   :  { %v178_v30 = vpop.f32.mrf.mxu0 }
 0x107   :  { %v181_v38 = vpop.f32.mrf.mxu0 }
 0x10f   :  { %v184_v39 = vpop.f32.mrf.mxu0 }
 0x147   :  { %v262_v53 = vpop.f32.mrf.mxu2 }
 0x148   :  { %v265_v55 = vadd.f32 %v262_v53, %v244_v52 }
 0x14a   :  { %v266_v56 = vadd.f32 %v265_v55, %v166_v54 }
 0x14c   :  { %v270_v57 = vmax.f32 %v266_v56, 0.0  ;;  %v296_v2 = vsub.f32 %v266_v56, %v269_v50 }
 0x14e   :  { %290 = vmatmul.f32.vlgmr.msra.gmra.mxu3 %v270_v57  ;;  %v297_v3 = vmul.f32 0.1, %v296_v2 }
 0x150   :  { %v298_v4 = vadd.f32 %v297_v3, %v269_v50 }
 0x152   :  { %v302_v5 = vmul.f32 -0.5, %v298_v4 }
 0x1d1   :  { %v291_v60 = vpop.f32.mrf.mxu3 }
 0x1d2   :  { %v294_v62 = vadd.f32 %v291_v60, %v273_v59 }
 0x1d4   :  { %v295_v63 = vadd.f32 %v294_v62, %v169_v61 }
 0x1d6   :  { %v299_v0 = vmax.f32 %v295_v63, 0.0  ;;  %v325_v13 = vsub.f32 %v295_v63, %v298_v4 }
 0x1d8   :  { %319 = vmatmul.f32.vlgmr.msrb.gmra.mxu1 %v299_v0  ;;  %v326_v14 = vmul.f32 0.1, %v325_v13 }
 0x1da   :  { %v327_v16 = vadd.f32 %v326_v14, %v298_v4 }
 0x1dc   :  { %v331_v17 = vmul.f32 -0.5, %v327_v16 }
 0x255   :  { %v320_v6 = vpop.f32.mrf.mxu1 }
 0x256   :  { %v323_v8 = vadd.f32 %v320_v6, %v302_v5 }
 0x258   :  { %v324_v9 = vadd.f32 %v323_v8, %v172_v7 }
 0x25a   :  { %v328_v10 = vmax.f32 %v324_v9, 0.0  ;;  %v354_v23 = vsub.f32 %v324_v9, %v327_v16 }
 0x25c   :  { %348 = vmatmul.f32.vlgmr.msrb.gmra.mxu2 %v328_v10  ;;  %v355_v24 = vmul.f32 0.1, %v354_v23 }
 0x25e   :  { %v356_v25 = vadd.f32 %v355_v24, %v327_v16 }
 0x260   :  { %v360_v28 = vmul.f32 -0.5, %v356_v25 }
 0x2df   :  { %v349_v18 = vpop.f32.mrf.mxu2 }
 0x2e0   :  { %v352_v20 = vadd.f32 %v349_v18, %v331_v17 }
 0x2e2   :  { %v353_v21 = vadd.f32 %v352_v20, %v175_v19 }
 0x2e4   :  { %v357_v22 = vmax.f32 %v353_v21, 0.0  ;;  %v383_v26 = vsub.f32 %v353_v21, %v356_v25 }
 0x2e6   :  { %377 = vmatmul.f32.vlgmr.msrb.gmra.mxu3 %v357_v22  ;;  %v384_v27 = vmul.f32 0.1, %v383_v26 }
 0x2e8   :  { %v385_v32 = vadd.f32 %v384_v27, %v356_v25 }
 0x2ea   :  { %v389_v40 = vmul.f32 -0.5, %v385_v32 }
 0x369   :  { %v378_v29 = vpop.f32.mrf.mxu3 }
 0x36a   :  { %v381_v31 = vadd.f32 %v378_v29, %v360_v28 }
 0x36c   :  { %v382_v33 = vadd.f32 %v381_v31, %v178_v30 }
 0x36e   :  { %v386_v34 = vmax.f32 %v382_v33, 0.0  ;;  %v412_v35 = vsub.f32 %v382_v33, %v385_v32 }
 0x370   :  { %v413_v36 = vmul.f32 0.1, %v412_v35  ;;  %406 = vmatmul.f32.vlgmr.msrb.gmra.mxu0 %v386_v34 }
 0x372   :  { %v414_v37 = vadd.f32 %v413_v36, %v385_v32 }
 0x374   :  { %v418_v48 = vmul.f32 -0.5, %v414_v37 }
 0x3ed   :  { %v407_v41 = vpop.f32.mrf.mxu0 }
 0x3ee   :  { %v410_v42 = vadd.f32 %v407_v41, %v389_v40 }
 0x3f0   :  { %v411_v43 = vadd.f32 %v410_v42, %v181_v38 }
 0x3f2   :  { %v415_v44 = vmax.f32 %v411_v43, 0.0  ;;  %v441_v45 = vsub.f32 %v411_v43, %v414_v37 }
 0x3f4   :  { %v442_v46 = vmul.f32 0.1, %v441_v45  ;;  %435 = vmatmul.f32.vlgmr.msra.gmra.mxu1 %v415_v44 }
 0x3f6   :  { %v443_v47 = vadd.f32 %v442_v46, %v414_v37 }
 0x3f8   :  { %447 = vst [vmem:[#allocation15] sm:$0xff] %v443_v47 }
 0x3f9   :  { %469 = dma.vmem_to_hbm [thread:$0]  %s465_s5, 128, %s467_s8, [#allocation16]  }
 0x471   :  { %v436_v49 = vpop.f32.mrf.mxu1 }
 0x472   :  { %v439_v50 = vadd.f32 %v436_v49, %v418_v48 }
 0x474   :  { %v440_v51 = vadd.f32 %v439_v50, %v184_v39 }
 0x476   :  { %v444_v52 = vmax.f32 %v440_v51, 0.0 }
 0x478   :  { %445 = vst [vmem:[#allocation14] sm:$0xff] %v444_v52 }
 0x479   :  { %458 = dma.vmem_to_hbm [thread:$0]  %s454_s10, 128, %s456_s13, [#allocation8]  }
 0x47a   :  { %695 = dma.done.wait [#allocation8], 128  }
 0x47b   :  { %696 = vsyncadd [#allocation8], 4294967168 }
 0x47c   :  { %697 = dma.done.wait [#allocation16], 128  }
 0x47d   :  { %698 = vsyncadd [#allocation16], 4294967168 }
 0x47e   :  { %478 = vsyncpa [#allocation7], 1 }
 0x47f   :  { %479 = vsyncpa [#allocation10], 1 }
 0x480   :  { %480 = vsyncpa [#allocation13], 1 }
 0x481   :  { %481 = vsyncpa [#allocation8], 1 }
 0x482   :  { %482 = vsyncpa [#allocation16], 1 }

</bundles_post_ra>
